<compile_context>
chip_gen: v5e
topology: v5e:2x2
jax: 0.10.0
libtpu: 0.0.40
codegen_flags: <defaults>
</compile_context>

<pallas_src>
import functools
import math

import jax
import jax.numpy as jnp
from jax.experimental import pallas as pl
from jax.experimental.pallas import tpu as pltpu


def _self_attn_kernel(*refs, nhead, eps, has_pe):
    if has_pe:
        x_ref, pe_ref, wqk_ref, bqk_ref, wv_ref, wo_ref, vec_ref, out_ref = refs
    else:
        x_ref, wqk_ref, bqk_ref, wv_ref, wo_ref, vec_ref, out_ref = refs
        pe_ref = None

    tb, S, D = x_ref.shape
    Dh = D // nhead
    R = tb * S

    # f32 activations: x is needed in f32 for the residual / LayerNorm path.
    x_in = x_ref[...].reshape(R, D)                       # (R, D)
    if has_pe:
        qk_in = x_in + pe_ref[...].reshape(R, D)          # VPU add, hidden under matmul
    else:
        qk_in = x_in

    vecs = vec_ref[...]                                   # (4, D): bv, bo, gamma, beta
    bv, bo, gamma, beta = vecs[0:1], vecs[1:2], vecs[2:3], vecs[3:4]

    # bf16 operands, f32 accumulation -> native MXU rate.
    qk_bf = qk_in.astype(jnp.bfloat16)
    x_bf = x_in.astype(jnp.bfloat16)

    # Fused Q/K projection (1/sqrt(Dh) folded into the Q half) + V projection.
    qk_proj = jnp.dot(qk_bf, wqk_ref[...],
                      preferred_element_type=jnp.float32) + bqk_ref[...]      # (R, 2D)
    v = jnp.dot(x_bf, wv_ref[...],
                preferred_element_type=jnp.float32) + bv                      # (R, D)

    q3 = qk_proj[:, :D].reshape(tb, S, D)
    k3 = qk_proj[:, D:].reshape(tb, S, D)
    v3 = v.reshape(tb, S, D)

    # Per-head attention, batched over the packed batch tile.  Each head's
    # context is folded directly into the output projection accumulator, so no
    # (TB,S,D) ctx scratch and no masked partial-lane stores are needed.
    # TODO(synk): for long sequences (S >~ 2k) replace the materialised (TB,S,S)
    # scores with a flash-style KV-tile loop (online softmax) to fit v7x's 64 MiB VMEM.
    # TODO(synk): for Dh < 128 a one-time head-major relayout of q/k/v would avoid
    # the narrow per-head lane slices; kept simple here (nhead is small).
    acc = jnp.zeros((R, D), jnp.float32)
    for h in range(nhead):
        lo = h * Dh
        qh = q3[:, :, lo:lo + Dh].astype(jnp.bfloat16)
        kh = k3[:, :, lo:lo + Dh].astype(jnp.bfloat16)
        vh = v3[:, :, lo:lo + Dh].astype(jnp.bfloat16)
        # (tb, S, S) scores: contract the head dim directly (no K transpose copy).
        s = jax.lax.dot_general(qh, kh, (((2,), (2,)), ((0,), (0,))),
                                preferred_element_type=jnp.float32)
        s = s - jnp.max(s, axis=-1, keepdims=True)
        p = jnp.exp(s)                                              # f32 softmax stats
        l = jnp.sum(p, axis=-1, keepdims=True)                      # (tb, S, 1)
        ctx_h = jax.lax.dot_general(p.astype(jnp.bfloat16), vh,
                                    (((2,), (1,)), ((0,), (0,))),
                                    preferred_element_type=jnp.float32)
        # Exact normalisation on the small (tb, S, Dh) context.
        ctx_h = ctx_h / l
        # Fold this head into the output projection: (R, Dh) @ (Dh, D).
        acc = acc + jnp.dot(ctx_h.reshape(R, Dh).astype(jnp.bfloat16),
                            wo_ref[lo:lo + Dh, :],
                            preferred_element_type=jnp.float32)

    # Output bias + residual + LayerNorm (all f32).
    y = acc + bo + x_in
    mean = jnp.mean(y, axis=-1, keepdims=True)
    var = jnp.mean(jnp.square(y - mean), axis=-1, keepdims=True)
    y = (y - mean) * jax.lax.rsqrt(var + eps)
    y = y * gamma + beta
    out_ref[...] = y.reshape(tb, S, D).astype(out_ref.dtype)


def _choose_batch_tile(B, S, target_rows=512, min_rows_for_split=256):
    """Largest divisor TB of B with TB*S <= ~target_rows MXU rows.  Only trade
    TB down for >=2 grid steps (v7x megacore) if that keeps >= min_rows_for_split
    rows per step — otherwise a single fat step wins on single-TC chips."""
    best = 1
    for cand in range(1, B + 1):
        if B % cand == 0 and cand * S <= max(target_rows, S):
            best = cand
    if B // best < 2:
        for cand in range(best - 1, 0, -1):
            if B % cand == 0 and B // cand >= 2 and cand * S >= min_rows_for_split:
                best = cand
                break
    return best


def _vmem_limit_bytes(TB, S, D, has_pe):
    """Explicit scoped-VMEM budget from the actual footprint (defaults are only
    16 MiB on v5e / 32 MiB on v6e & v7x)."""
    f32, bf16 = 4, 2
    R = TB * S
    n_seq_tiles = (2 if has_pe else 1) + 1                    # x, pe, out
    est = 2 * n_seq_tiles * TB * S * D * f32                  # double-buffered seq tiles
    est += 2 * (2 * D * D + 2 * D * D) * bf16                 # wqk + wv + wo (double-buffered)
    est += 2 * (2 * D + 4 * D) * f32                          # bqk + stacked vectors
    est += R * (2 * D + D + D) * f32                          # qk_proj, v, acc
    est += 2 * TB * S * S * f32                               # scores + probs (one head live)
    est += R * D * f32                                        # slack for slices / relayouts
    return int(min(max(2 * est, 32 * 2 ** 20), 64 * 2 ** 20))


def self_attention_layer(x, pe, params, *, nhead, eps=1e-5):
    """x: (B, S, D) float32, pe: (B, S, D) or None."""
    B, S, D = x.shape
    Dh = D // nhead
    has_pe = pe is not None

    # One-time parameter prep (host/XLA side, outside the kernel):
    #  - fold the 1/sqrt(Dh) attention scale into wq / bq,
    #  - fuse the Q and K projections into one (D, 2D) weight,
    #  - cast weights to bf16 once (halves weight DMA; matmuls accumulate in f32),
    #  - stack the small per-channel vectors into a single (4, D) operand.
    scale = 1.0 / math.sqrt(Dh)
    w_qk = jnp.concatenate([params["wq"] * scale, params["wk"]],
                           axis=1).astype(jnp.bfloat16)                       # (D, 2D)
    b_qk = jnp.concatenate([params["bq"] * scale, params["bk"]],
                           axis=1).astype(jnp.float32)                        # (1, 2D)
    w_v = params["wv"].astype(jnp.bfloat16)                                   # (D, D)
    w_o = params["wo"].astype(jnp.bfloat16)                                   # (D, D)
    vecs = jnp.concatenate([params["bv"], params["bo"],
                            params["gamma"], params["beta"]],
                           axis=0).astype(jnp.float32)                        # (4, D)

    TB = _choose_batch_tile(B, S)
    grid = (B // TB,)

    kernel = functools.partial(_self_attn_kernel, nhead=nhead, eps=eps, has_pe=has_pe)

    seq_spec = pl.BlockSpec((TB, S, D), lambda b: (b, 0, 0))

    in_specs = [seq_spec]
    inputs = [x]
    if has_pe:
        in_specs.append(seq_spec)
        inputs.append(pe)
    in_specs += [pl.BlockSpec((D, 2 * D), lambda b: (0, 0)),
                 pl.BlockSpec((1, 2 * D), lambda b: (0, 0)),
                 pl.BlockSpec((D, D), lambda b: (0, 0)),
                 pl.BlockSpec((D, D), lambda b: (0, 0)),
                 pl.BlockSpec((4, D), lambda b: (0, 0))]
    inputs += [w_qk, b_qk, w_v, w_o, vecs]

    return pl.pallas_call(
        kernel,
        out_shape=jax.ShapeDtypeStruct((B, S, D), x.dtype),
        grid=grid,
        in_specs=in_specs,
        out_specs=seq_spec,
        compiler_params=pltpu.CompilerParams(
            dimension_semantics=("parallel",),
            vmem_limit_bytes=_vmem_limit_bytes(TB, S, D, has_pe)),
    )(*inputs)


def _reference(x, pe, params, nhead, eps=1e-5):
    B, S, D = x.shape
    Dh = D // nhead
    qk = x if pe is None else x + pe
    q = qk @ params["wq"] + params["bq"]
    k = qk @ params["wk"] + params["bk"]
    v = x @ params["wv"] + params["bv"]
    qh = q.reshape(B, S, nhead, Dh).transpose(0, 2, 1, 3)
    kh = k.reshape(B, S, nhead, Dh).transpose(0, 2, 1, 3)
    vh = v.reshape(B, S, nhead, Dh).transpose(0, 2, 1, 3)
    s = (qh @ kh.transpose(0, 1, 3, 2)) / jnp.sqrt(jnp.float32(Dh))
    p = jax.nn.softmax(s, axis=-1)
    ctx = (p @ vh).transpose(0, 2, 1, 3).reshape(B, S, D)
    o = ctx @ params["wo"] + params["bo"] + x
    m = o.mean(-1, keepdims=True)
    var = ((o - m) ** 2).mean(-1, keepdims=True)
    return (o - m) / jnp.sqrt(var + eps) * params["gamma"] + params["beta"]


if __name__ == "__main__":
    # Small shapes consistent with the module: (b, seq, d_model), nhead heads.
    B, S, D, H = 2, 8, 32, 4

    key = jax.random.PRNGKey(0)
    keys = jax.random.split(key, 12)
    wscale = 1.0 / (D ** 0.5)

    # Deterministic synthetic parameters. Weights are stored pre-transposed
    # (input @ W form), equivalent to PyTorch's in_proj_weight/out_proj.weight.T.
    params = {
        "wq": jax.random.normal(keys[0], (D, D), jnp.float32) * wscale,
        "wk": jax.random.normal(keys[1], (D, D), jnp.float32) * wscale,
        "wv": jax.random.normal(keys[2], (D, D), jnp.float32) * wscale,
        "bq": jax.random.normal(keys[3], (1, D), jnp.float32) * 0.01,
        "bk": jax.random.normal(keys[4], (1, D), jnp.float32) * 0.01,
        "bv": jax.random.normal(keys[5], (1, D), jnp.float32) * 0.01,
        "wo": jax.random.normal(keys[6], (D, D), jnp.float32) * wscale,
        "bo": jax.random.normal(keys[7], (1, D), jnp.float32) * 0.01,
        "gamma": jnp.ones((1, D), jnp.float32),
        "beta": jnp.zeros((1, D), jnp.float32),
    }

    x = jax.random.normal(keys[8], (B, S, D), jnp.float32)
    pe = jax.random.normal(keys[9], (B, S, D), jnp.float32)

    out = self_attention_layer(x, pe, params, nhead=H)
    out = jax.block_until_ready(out)

    ref = _reference(x, pe, params, H)
    assert out.shape == (B, S, D)
    # Tolerance accounts for bf16 MXU operands (weights / activations /
    # probabilities) with f32 accumulation vs. the all-f32 JAX reference.
    assert jnp.allclose(out, ref, atol=5e-2, rtol=5e-2), "mismatch vs JAX reference"

    print("KERNEL_OK")
</pallas_src>

<mosaic_0001>
module attributes {stable_mosaic.version = 11 : i64} {
  func.func @_self_attn_kernel(%arg0: i32, %arg1: memref<2x8x32xf32, #tpu.memory_space<vmem>>, %arg2: memref<2x8x32xf32, #tpu.memory_space<vmem>>, %arg3: memref<32x64xbf16, #tpu.memory_space<vmem>>, %arg4: memref<1x64xf32, #tpu.memory_space<vmem>>, %arg5: memref<32x32xbf16, #tpu.memory_space<vmem>>, %arg6: memref<32x32xbf16, #tpu.memory_space<vmem>>, %arg7: memref<4x32xf32, #tpu.memory_space<vmem>>, %arg8: memref<2x8x32xf32, #tpu.memory_space<vmem>>) attributes {dimension_semantics = [#tpu.dimension_semantics<parallel>], iteration_bounds = array<i64: 1>, scalar_prefetch = 0 : i64, scratch_operands = 0 : i64, tpu.core_type = #tpu.core_type<tc>, window_params = [{transform_indices = @transform_0, window_bounds = array<i64: 2, 8, 32>}, {transform_indices = @transform_1, window_bounds = array<i64: 2, 8, 32>}, {pipeline_mode = #tpu.pipeline_mode<synchronous>, transform_indices = @transform_2, window_bounds = array<i64: 32, 64>}, {pipeline_mode = #tpu.pipeline_mode<synchronous>, transform_indices = @transform_3, window_bounds = array<i64: 1, 64>}, {pipeline_mode = #tpu.pipeline_mode<synchronous>, transform_indices = @transform_4, window_bounds = array<i64: 32, 32>}, {pipeline_mode = #tpu.pipeline_mode<synchronous>, transform_indices = @transform_5, window_bounds = array<i64: 32, 32>}, {pipeline_mode = #tpu.pipeline_mode<synchronous>, transform_indices = @transform_6, window_bounds = array<i64: 4, 32>}, {transform_indices = @transform_7, window_bounds = array<i64: 2, 8, 32>}]} {
    %c0 = arith.constant 0 : index
    %c0_0 = arith.constant 0 : index
    %c0_1 = arith.constant 0 : index
    %0 = vector.load %arg1[%c0, %c0_0, %c0_1] : memref<2x8x32xf32, #tpu.memory_space<vmem>>, vector<2x8x32xf32>
    %1 = vector.shape_cast %0 : vector<2x8x32xf32> to vector<16x32xf32>
    %c0_2 = arith.constant 0 : index
    %c0_3 = arith.constant 0 : index
    %c0_4 = arith.constant 0 : index
    %2 = vector.load %arg2[%c0_2, %c0_3, %c0_4] : memref<2x8x32xf32, #tpu.memory_space<vmem>>, vector<2x8x32xf32>
    %3 = vector.shape_cast %2 : vector<2x8x32xf32> to vector<16x32xf32>
    %4 = arith.addf %1, %3 : vector<16x32xf32>
    %c0_5 = arith.constant 0 : index
    %c0_6 = arith.constant 0 : index
    %5 = vector.load %arg7[%c0_5, %c0_6] : memref<4x32xf32, #tpu.memory_space<vmem>>, vector<4x32xf32>
    %6 = vector.extract_strided_slice %5 {offsets = [0, 0], sizes = [1, 32], strides = [1, 1]} : vector<4x32xf32> to vector<1x32xf32>
    %7 = vector.extract_strided_slice %5 {offsets = [1, 0], sizes = [1, 32], strides = [1, 1]} : vector<4x32xf32> to vector<1x32xf32>
    %8 = vector.extract_strided_slice %5 {offsets = [2, 0], sizes = [1, 32], strides = [1, 1]} : vector<4x32xf32> to vector<1x32xf32>
    %9 = vector.extract_strided_slice %5 {offsets = [3, 0], sizes = [1, 32], strides = [1, 1]} : vector<4x32xf32> to vector<1x32xf32>
    %10 = arith.truncf %4 : vector<16x32xf32> to vector<16x32xbf16>
    %11 = arith.truncf %1 : vector<16x32xf32> to vector<16x32xbf16>
    %c0_7 = arith.constant 0 : index
    %c0_8 = arith.constant 0 : index
    %12 = vector.load %arg3[%c0_7, %c0_8] : memref<32x64xbf16, #tpu.memory_space<vmem>>, vector<32x64xbf16>
    %cst = arith.constant dense<0.000000e+00> : vector<16x64xf32>
    %13 = tpu.matmul %10, %12, %cst {dimension_numbers = #tpu.dot_dimension_numbers<[1], [0], [0], [1], [0, 0, 1, 1], [], []>} : vector<16x32xbf16>, vector<32x64xbf16>, vector<16x64xf32> -> vector<16x64xf32>
    %c0_9 = arith.constant 0 : index
    %c0_10 = arith.constant 0 : index
    %14 = vector.load %arg4[%c0_9, %c0_10] : memref<1x64xf32, #tpu.memory_space<vmem>>, vector<1x64xf32>
    %15 = vector.broadcast %14 : vector<1x64xf32> to vector<16x64xf32>
    %16 = arith.addf %13, %15 : vector<16x64xf32>
    %c0_11 = arith.constant 0 : index
    %c0_12 = arith.constant 0 : index
    %17 = vector.load %arg5[%c0_11, %c0_12] : memref<32x32xbf16, #tpu.memory_space<vmem>>, vector<32x32xbf16>
    %cst_13 = arith.constant dense<0.000000e+00> : vector<16x32xf32>
    %18 = tpu.matmul %11, %17, %cst_13 {dimension_numbers = #tpu.dot_dimension_numbers<[1], [0], [0], [1], [0, 0, 1, 1], [], []>} : vector<16x32xbf16>, vector<32x32xbf16>, vector<16x32xf32> -> vector<16x32xf32>
    %19 = vector.broadcast %6 : vector<1x32xf32> to vector<16x32xf32>
    %20 = arith.addf %18, %19 : vector<16x32xf32>
    %21 = vector.extract_strided_slice %16 {offsets = [0, 0], sizes = [16, 32], strides = [1, 1]} : vector<16x64xf32> to vector<16x32xf32>
    %22 = vector.shape_cast %21 : vector<16x32xf32> to vector<2x8x32xf32>
    %23 = vector.extract_strided_slice %16 {offsets = [0, 32], sizes = [16, 32], strides = [1, 1]} : vector<16x64xf32> to vector<16x32xf32>
    %24 = vector.shape_cast %23 : vector<16x32xf32> to vector<2x8x32xf32>
    %25 = vector.shape_cast %20 : vector<16x32xf32> to vector<2x8x32xf32>
    %cst_14 = arith.constant 0.000000e+00 : f32
    %26 = vector.broadcast %cst_14 : f32 to vector<16x32xf32>
    %27 = vector.extract_strided_slice %22 {offsets = [0, 0, 0], sizes = [2, 8, 8], strides = [1, 1, 1]} : vector<2x8x32xf32> to vector<2x8x8xf32>
    %28 = arith.truncf %27 : vector<2x8x8xf32> to vector<2x8x8xbf16>
    %29 = vector.extract_strided_slice %24 {offsets = [0, 0, 0], sizes = [2, 8, 8], strides = [1, 1, 1]} : vector<2x8x32xf32> to vector<2x8x8xf32>
    %30 = arith.truncf %29 : vector<2x8x8xf32> to vector<2x8x8xbf16>
    %31 = vector.extract_strided_slice %25 {offsets = [0, 0, 0], sizes = [2, 8, 8], strides = [1, 1, 1]} : vector<2x8x32xf32> to vector<2x8x8xf32>
    %32 = arith.truncf %31 : vector<2x8x8xf32> to vector<2x8x8xbf16>
    %cst_15 = arith.constant dense<0.000000e+00> : vector<2x8x8xf32>
    %33 = tpu.matmul %28, %30, %cst_15 {dimension_numbers = #tpu.dot_dimension_numbers<[2], [2], [1], [1], [0, 0, 0, 1, 1, 1], [0], [0]>} : vector<2x8x8xbf16>, vector<2x8x8xbf16>, vector<2x8x8xf32> -> vector<2x8x8xf32>
    %cst_16 = arith.constant dense<0xFF800000> : vector<2x8xf32>
    %34 = vector.multi_reduction <maximumf>, %33, %cst_16 [2] : vector<2x8x8xf32> to vector<2x8xf32>
    %35 = vector.shape_cast %34 : vector<2x8xf32> to vector<2x8x1xf32>
    %36 = vector.broadcast %35 : vector<2x8x1xf32> to vector<2x8x8xf32>
    %37 = arith.subf %33, %36 : vector<2x8x8xf32>
    %38 = math.exp %37 : vector<2x8x8xf32>
    %cst_17 = arith.constant dense<0.000000e+00> : vector<2x8xf32>
    %39 = vector.multi_reduction <add>, %38, %cst_17 [2] : vector<2x8x8xf32> to vector<2x8xf32>
    %40 = vector.shape_cast %39 : vector<2x8xf32> to vector<2x8x1xf32>
    %41 = arith.truncf %38 : vector<2x8x8xf32> to vector<2x8x8xbf16>
    %cst_18 = arith.constant dense<0.000000e+00> : vector<2x8x8xf32>
    %42 = tpu.matmul %41, %32, %cst_18 {dimension_numbers = #tpu.dot_dimension_numbers<[2], [1], [1], [2], [0, 0, 0, 1, 1, 2], [0], [0]>} : vector<2x8x8xbf16>, vector<2x8x8xbf16>, vector<2x8x8xf32> -> vector<2x8x8xf32>
    %43 = vector.broadcast %40 : vector<2x8x1xf32> to vector<2x8x8xf32>
    %44 = arith.divf %42, %43 : vector<2x8x8xf32>
    %45 = vector.shape_cast %44 : vector<2x8x8xf32> to vector<16x8xf32>
    %46 = arith.truncf %45 : vector<16x8xf32> to vector<16x8xbf16>
    %c0_19 = arith.constant 0 : index
    %c0_20 = arith.constant 0 : index
    %47 = vector.load %arg6[%c0_19, %c0_20] : memref<32x32xbf16, #tpu.memory_space<vmem>>, vector<8x32xbf16>
    %cst_21 = arith.constant dense<0.000000e+00> : vector<16x32xf32>
    %48 = tpu.matmul %46, %47, %cst_21 {dimension_numbers = #tpu.dot_dimension_numbers<[1], [0], [0], [1], [0, 0, 1, 1], [], []>} : vector<16x8xbf16>, vector<8x32xbf16>, vector<16x32xf32> -> vector<16x32xf32>
    %49 = arith.addf %26, %48 : vector<16x32xf32>
    %50 = vector.extract_strided_slice %22 {offsets = [0, 0, 8], sizes = [2, 8, 8], strides = [1, 1, 1]} : vector<2x8x32xf32> to vector<2x8x8xf32>
    %51 = arith.truncf %50 : vector<2x8x8xf32> to vector<2x8x8xbf16>
    %52 = vector.extract_strided_slice %24 {offsets = [0, 0, 8], sizes = [2, 8, 8], strides = [1, 1, 1]} : vector<2x8x32xf32> to vector<2x8x8xf32>
    %53 = arith.truncf %52 : vector<2x8x8xf32> to vector<2x8x8xbf16>
    %54 = vector.extract_strided_slice %25 {offsets = [0, 0, 8], sizes = [2, 8, 8], strides = [1, 1, 1]} : vector<2x8x32xf32> to vector<2x8x8xf32>
    %55 = arith.truncf %54 : vector<2x8x8xf32> to vector<2x8x8xbf16>
    %cst_22 = arith.constant dense<0.000000e+00> : vector<2x8x8xf32>
    %56 = tpu.matmul %51, %53, %cst_22 {dimension_numbers = #tpu.dot_dimension_numbers<[2], [2], [1], [1], [0, 0, 0, 1, 1, 1], [0], [0]>} : vector<2x8x8xbf16>, vector<2x8x8xbf16>, vector<2x8x8xf32> -> vector<2x8x8xf32>
    %cst_23 = arith.constant dense<0xFF800000> : vector<2x8xf32>
    %57 = vector.multi_reduction <maximumf>, %56, %cst_23 [2] : vector<2x8x8xf32> to vector<2x8xf32>
    %58 = vector.shape_cast %57 : vector<2x8xf32> to vector<2x8x1xf32>
    %59 = vector.broadcast %58 : vector<2x8x1xf32> to vector<2x8x8xf32>
    %60 = arith.subf %56, %59 : vector<2x8x8xf32>
    %61 = math.exp %60 : vector<2x8x8xf32>
    %cst_24 = arith.constant dense<0.000000e+00> : vector<2x8xf32>
    %62 = vector.multi_reduction <add>, %61, %cst_24 [2] : vector<2x8x8xf32> to vector<2x8xf32>
    %63 = vector.shape_cast %62 : vector<2x8xf32> to vector<2x8x1xf32>
    %64 = arith.truncf %61 : vector<2x8x8xf32> to vector<2x8x8xbf16>
    %cst_25 = arith.constant dense<0.000000e+00> : vector<2x8x8xf32>
    %65 = tpu.matmul %64, %55, %cst_25 {dimension_numbers = #tpu.dot_dimension_numbers<[2], [1], [1], [2], [0, 0, 0, 1, 1, 2], [0], [0]>} : vector<2x8x8xbf16>, vector<2x8x8xbf16>, vector<2x8x8xf32> -> vector<2x8x8xf32>
    %66 = vector.broadcast %63 : vector<2x8x1xf32> to vector<2x8x8xf32>
    %67 = arith.divf %65, %66 : vector<2x8x8xf32>
    %68 = vector.shape_cast %67 : vector<2x8x8xf32> to vector<16x8xf32>
    %69 = arith.truncf %68 : vector<16x8xf32> to vector<16x8xbf16>
    %c8 = arith.constant 8 : index
    %c0_26 = arith.constant 0 : index
    %70 = vector.load %arg6[%c8, %c0_26] : memref<32x32xbf16, #tpu.memory_space<vmem>>, vector<8x32xbf16>
    %cst_27 = arith.constant dense<0.000000e+00> : vector<16x32xf32>
    %71 = tpu.matmul %69, %70, %cst_27 {dimension_numbers = #tpu.dot_dimension_numbers<[1], [0], [0], [1], [0, 0, 1, 1], [], []>} : vector<16x8xbf16>, vector<8x32xbf16>, vector<16x32xf32> -> vector<16x32xf32>
    %72 = arith.addf %49, %71 : vector<16x32xf32>
    %73 = vector.extract_strided_slice %22 {offsets = [0, 0, 16], sizes = [2, 8, 8], strides = [1, 1, 1]} : vector<2x8x32xf32> to vector<2x8x8xf32>
    %74 = arith.truncf %73 : vector<2x8x8xf32> to vector<2x8x8xbf16>
    %75 = vector.extract_strided_slice %24 {offsets = [0, 0, 16], sizes = [2, 8, 8], strides = [1, 1, 1]} : vector<2x8x32xf32> to vector<2x8x8xf32>
    %76 = arith.truncf %75 : vector<2x8x8xf32> to vector<2x8x8xbf16>
    %77 = vector.extract_strided_slice %25 {offsets = [0, 0, 16], sizes = [2, 8, 8], strides = [1, 1, 1]} : vector<2x8x32xf32> to vector<2x8x8xf32>
    %78 = arith.truncf %77 : vector<2x8x8xf32> to vector<2x8x8xbf16>
    %cst_28 = arith.constant dense<0.000000e+00> : vector<2x8x8xf32>
    %79 = tpu.matmul %74, %76, %cst_28 {dimension_numbers = #tpu.dot_dimension_numbers<[2], [2], [1], [1], [0, 0, 0, 1, 1, 1], [0], [0]>} : vector<2x8x8xbf16>, vector<2x8x8xbf16>, vector<2x8x8xf32> -> vector<2x8x8xf32>
    %cst_29 = arith.constant dense<0xFF800000> : vector<2x8xf32>
    %80 = vector.multi_reduction <maximumf>, %79, %cst_29 [2] : vector<2x8x8xf32> to vector<2x8xf32>
    %81 = vector.shape_cast %80 : vector<2x8xf32> to vector<2x8x1xf32>
    %82 = vector.broadcast %81 : vector<2x8x1xf32> to vector<2x8x8xf32>
    %83 = arith.subf %79, %82 : vector<2x8x8xf32>
    %84 = math.exp %83 : vector<2x8x8xf32>
    %cst_30 = arith.constant dense<0.000000e+00> : vector<2x8xf32>
    %85 = vector.multi_reduction <add>, %84, %cst_30 [2] : vector<2x8x8xf32> to vector<2x8xf32>
    %86 = vector.shape_cast %85 : vector<2x8xf32> to vector<2x8x1xf32>
    %87 = arith.truncf %84 : vector<2x8x8xf32> to vector<2x8x8xbf16>
    %cst_31 = arith.constant dense<0.000000e+00> : vector<2x8x8xf32>
    %88 = tpu.matmul %87, %78, %cst_31 {dimension_numbers = #tpu.dot_dimension_numbers<[2], [1], [1], [2], [0, 0, 0, 1, 1, 2], [0], [0]>} : vector<2x8x8xbf16>, vector<2x8x8xbf16>, vector<2x8x8xf32> -> vector<2x8x8xf32>
    %89 = vector.broadcast %86 : vector<2x8x1xf32> to vector<2x8x8xf32>
    %90 = arith.divf %88, %89 : vector<2x8x8xf32>
    %91 = vector.shape_cast %90 : vector<2x8x8xf32> to vector<16x8xf32>
    %92 = arith.truncf %91 : vector<16x8xf32> to vector<16x8xbf16>
    %c16 = arith.constant 16 : index
    %c0_32 = arith.constant 0 : index
    %93 = vector.load %arg6[%c16, %c0_32] : memref<32x32xbf16, #tpu.memory_space<vmem>>, vector<8x32xbf16>
    %cst_33 = arith.constant dense<0.000000e+00> : vector<16x32xf32>
    %94 = tpu.matmul %92, %93, %cst_33 {dimension_numbers = #tpu.dot_dimension_numbers<[1], [0], [0], [1], [0, 0, 1, 1], [], []>} : vector<16x8xbf16>, vector<8x32xbf16>, vector<16x32xf32> -> vector<16x32xf32>
    %95 = arith.addf %72, %94 : vector<16x32xf32>
    %96 = vector.extract_strided_slice %22 {offsets = [0, 0, 24], sizes = [2, 8, 8], strides = [1, 1, 1]} : vector<2x8x32xf32> to vector<2x8x8xf32>
    %97 = arith.truncf %96 : vector<2x8x8xf32> to vector<2x8x8xbf16>
    %98 = vector.extract_strided_slice %24 {offsets = [0, 0, 24], sizes = [2, 8, 8], strides = [1, 1, 1]} : vector<2x8x32xf32> to vector<2x8x8xf32>
    %99 = arith.truncf %98 : vector<2x8x8xf32> to vector<2x8x8xbf16>
    %100 = vector.extract_strided_slice %25 {offsets = [0, 0, 24], sizes = [2, 8, 8], strides = [1, 1, 1]} : vector<2x8x32xf32> to vector<2x8x8xf32>
    %101 = arith.truncf %100 : vector<2x8x8xf32> to vector<2x8x8xbf16>
    %cst_34 = arith.constant dense<0.000000e+00> : vector<2x8x8xf32>
    %102 = tpu.matmul %97, %99, %cst_34 {dimension_numbers = #tpu.dot_dimension_numbers<[2], [2], [1], [1], [0, 0, 0, 1, 1, 1], [0], [0]>} : vector<2x8x8xbf16>, vector<2x8x8xbf16>, vector<2x8x8xf32> -> vector<2x8x8xf32>
    %cst_35 = arith.constant dense<0xFF800000> : vector<2x8xf32>
    %103 = vector.multi_reduction <maximumf>, %102, %cst_35 [2] : vector<2x8x8xf32> to vector<2x8xf32>
    %104 = vector.shape_cast %103 : vector<2x8xf32> to vector<2x8x1xf32>
    %105 = vector.broadcast %104 : vector<2x8x1xf32> to vector<2x8x8xf32>
    %106 = arith.subf %102, %105 : vector<2x8x8xf32>
    %107 = math.exp %106 : vector<2x8x8xf32>
    %cst_36 = arith.constant dense<0.000000e+00> : vector<2x8xf32>
    %108 = vector.multi_reduction <add>, %107, %cst_36 [2] : vector<2x8x8xf32> to vector<2x8xf32>
    %109 = vector.shape_cast %108 : vector<2x8xf32> to vector<2x8x1xf32>
    %110 = arith.truncf %107 : vector<2x8x8xf32> to vector<2x8x8xbf16>
    %cst_37 = arith.constant dense<0.000000e+00> : vector<2x8x8xf32>
    %111 = tpu.matmul %110, %101, %cst_37 {dimension_numbers = #tpu.dot_dimension_numbers<[2], [1], [1], [2], [0, 0, 0, 1, 1, 2], [0], [0]>} : vector<2x8x8xbf16>, vector<2x8x8xbf16>, vector<2x8x8xf32> -> vector<2x8x8xf32>
    %112 = vector.broadcast %109 : vector<2x8x1xf32> to vector<2x8x8xf32>
    %113 = arith.divf %111, %112 : vector<2x8x8xf32>
    %114 = vector.shape_cast %113 : vector<2x8x8xf32> to vector<16x8xf32>
    %115 = arith.truncf %114 : vector<16x8xf32> to vector<16x8xbf16>
    %c24 = arith.constant 24 : index
    %c0_38 = arith.constant 0 : index
    %116 = vector.load %arg6[%c24, %c0_38] : memref<32x32xbf16, #tpu.memory_space<vmem>>, vector<8x32xbf16>
    %cst_39 = arith.constant dense<0.000000e+00> : vector<16x32xf32>
    %117 = tpu.matmul %115, %116, %cst_39 {dimension_numbers = #tpu.dot_dimension_numbers<[1], [0], [0], [1], [0, 0, 1, 1], [], []>} : vector<16x8xbf16>, vector<8x32xbf16>, vector<16x32xf32> -> vector<16x32xf32>
    %118 = arith.addf %95, %117 : vector<16x32xf32>
    %119 = vector.broadcast %7 : vector<1x32xf32> to vector<16x32xf32>
    %120 = arith.addf %118, %119 : vector<16x32xf32>
    %121 = arith.addf %120, %1 : vector<16x32xf32>
    %cst_40 = arith.constant dense<0.000000e+00> : vector<16xf32>
    %122 = vector.multi_reduction <add>, %121, %cst_40 [1] : vector<16x32xf32> to vector<16xf32>
    %123 = vector.shape_cast %122 : vector<16xf32> to vector<16x1xf32>
    %cst_41 = arith.constant 3.200000e+01 : f32
    %124 = vector.broadcast %cst_41 : f32 to vector<16x1xf32>
    %125 = arith.divf %123, %124 : vector<16x1xf32>
    %126 = vector.broadcast %125 : vector<16x1xf32> to vector<16x32xf32>
    %127 = arith.subf %121, %126 : vector<16x32xf32>
    %128 = arith.mulf %127, %127 : vector<16x32xf32>
    %cst_42 = arith.constant dense<0.000000e+00> : vector<16xf32>
    %129 = vector.multi_reduction <add>, %128, %cst_42 [1] : vector<16x32xf32> to vector<16xf32>
    %130 = vector.shape_cast %129 : vector<16xf32> to vector<16x1xf32>
    %cst_43 = arith.constant 3.200000e+01 : f32
    %131 = vector.broadcast %cst_43 : f32 to vector<16x1xf32>
    %132 = arith.divf %130, %131 : vector<16x1xf32>
    %133 = vector.broadcast %125 : vector<16x1xf32> to vector<16x32xf32>
    %134 = arith.subf %121, %133 : vector<16x32xf32>
    %cst_44 = arith.constant 9.99999974E-6 : f32
    %135 = vector.broadcast %cst_44 : f32 to vector<16x1xf32>
    %136 = arith.addf %132, %135 : vector<16x1xf32>
    %137 = math.rsqrt %136 : vector<16x1xf32>
    %138 = vector.broadcast %137 : vector<16x1xf32> to vector<16x32xf32>
    %139 = arith.mulf %134, %138 : vector<16x32xf32>
    %140 = vector.broadcast %8 : vector<1x32xf32> to vector<16x32xf32>
    %141 = arith.mulf %139, %140 : vector<16x32xf32>
    %142 = vector.broadcast %9 : vector<1x32xf32> to vector<16x32xf32>
    %143 = arith.addf %141, %142 : vector<16x32xf32>
    %144 = vector.shape_cast %143 : vector<16x32xf32> to vector<2x8x32xf32>
    %c0_45 = arith.constant 0 : index
    %c0_46 = arith.constant 0 : index
    %c0_47 = arith.constant 0 : index
    %145 = vector.load %arg8[%c0_45, %c0_46, %c0_47] : memref<2x8x32xf32, #tpu.memory_space<vmem>>, vector<2x8x32xf32>
    tpu.vector_store %arg8[%c0_45, %c0_46, %c0_47], %144 {strides = array<i32>} : memref<2x8x32xf32, #tpu.memory_space<vmem>>, vector<2x8x32xf32>,
    return
  }
  func.func @transform_0(%arg0: i32) -> (i32, i32, i32) {
    %c0_i32 = arith.constant 0 : i32
    %c0_i32_0 = arith.constant 0 : i32
    %c0_i32_1 = arith.constant 0 : i32
    return %arg0, %c0_i32, %c0_i32_0 : i32, i32, i32
  }
  func.func @transform_1(%arg0: i32) -> (i32, i32, i32) {
    %c0_i32 = arith.constant 0 : i32
    %c0_i32_0 = arith.constant 0 : i32
    %c0_i32_1 = arith.constant 0 : i32
    return %arg0, %c0_i32, %c0_i32_0 : i32, i32, i32
  }
  func.func @transform_2(%arg0: i32) -> (i32, i32) {
    %c0_i32 = arith.constant 0 : i32
    %c0_i32_0 = arith.constant 0 : i32
    %c0_i32_1 = arith.constant 0 : i32
    return %c0_i32, %c0_i32_0 : i32, i32
  }
  func.func @transform_3(%arg0: i32) -> (i32, i32) {
    %c0_i32 = arith.constant 0 : i32
    %c0_i32_0 = arith.constant 0 : i32
    %c0_i32_1 = arith.constant 0 : i32
    return %c0_i32, %c0_i32_0 : i32, i32
  }
  func.func @transform_4(%arg0: i32) -> (i32, i32) {
    %c0_i32 = arith.constant 0 : i32
    %c0_i32_0 = arith.constant 0 : i32
    %c0_i32_1 = arith.constant 0 : i32
    return %c0_i32, %c0_i32_0 : i32, i32
  }
  func.func @transform_5(%arg0: i32) -> (i32, i32) {
    %c0_i32 = arith.constant 0 : i32
    %c0_i32_0 = arith.constant 0 : i32
    %c0_i32_1 = arith.constant 0 : i32
    return %c0_i32, %c0_i32_0 : i32, i32
  }
  func.func @transform_6(%arg0: i32) -> (i32, i32) {
    %c0_i32 = arith.constant 0 : i32
    %c0_i32_0 = arith.constant 0 : i32
    %c0_i32_1 = arith.constant 0 : i32
    return %c0_i32, %c0_i32_0 : i32, i32
  }
  func.func @transform_7(%arg0: i32) -> (i32, i32, i32) {
    %c0_i32 = arith.constant 0 : i32
    %c0_i32_0 = arith.constant 0 : i32
    %c0_i32_1 = arith.constant 0 : i32
    return %arg0, %c0_i32, %c0_i32_0 : i32, i32, i32
  }
}

</mosaic_0001>

<bundles_post_ra>
// kernel: tpu_custom_call.1
= control target key start
LH: loop header
LB: loop body
LE: loop exit
PB: predicated region body
PF: predicated region fallthrough
CT: control target
= control target key end

     0   :  { %12 = vsyncpa [#allocation3], 0  ;;  %s1415_s0 = inlined_call_operand.hbm [shape: f32[2,8,32], index: 0, kind: input, shape index: {}]   ;;  %s1416_s1 = inlined_call_operand.hbm [shape: f32[2,8,32], index: 1, kind: input, shape index: {}]   ;;  %s1417_s2 = inlined_call_operand.hbm [shape: bf16[32,64], index: 2, kind: input, shape index: {}]   ;;  %s1418_s3 = inlined_call_operand.vmem [shape: f32[1,64], index: 3, kind: input, shape index: {}]   ;;  %s1419_s4 = inlined_call_operand.hbm [shape: bf16[32,32], index: 4, kind: input, shape index: {}]   ;;  %s1420_s5 = inlined_call_operand.hbm [shape: bf16[32,32], index: 5, kind: input, shape index: {}]   ;;  %s1421_s6 = inlined_call_operand.vmem [shape: f32[4,32], index: 6, kind: input, shape index: {}]   ;;  %s1422_s7 = inlined_call_operand.hbm [shape: f32[2,8,32], index: 7, kind: output, shape index: {}]  }
   0x1   :  { %13 = vsyncpa [#allocation6], 0 }
   0x2   :  { %14 = vsyncpa [#allocation9], 0 }
   0x3   :  { %15 = vsyncpa [#allocation4], 0  ;;  %s33_s26 = sshll.u32 %s1416_s1, 4  ;;  %s1177_s27 = smov [#allocation5]   ;;  %s34_s26 = int_to_ptr.hbm [resolvable:$true] %s33_s26 }
   0x4   :  { %s35_s28 = sshll.u32 %s1177_s27, 4  ;;  %s1178_s29 = smov 128   ;;  %s36_s28 = int_to_ptr.vmem [resolvable:$true] %s35_s28 }
   0x5   :  { %s1179_s30 = smov 8   ;;  %s61_s10 = sshll.u32 %s1419_s4, 4  ;;  %s62_s10 = int_to_ptr.hbm [resolvable:$true] %s61_s10 }
   0x6   :  { %41 = dma.hbm_to_vmem [thread:$0]  %s34_s26, 256, %s36_s28, [#allocation6], %s1178_s29, %s1178_s29, %s1179_s30  }
   0x7   :  { %s1180_s11 = smov [#allocation8]   ;;  %s20_s1 = sshll.u32 %s1415_s0, 4  ;;  %s21_s1 = int_to_ptr.hbm [resolvable:$true] %s20_s1 }
   0x8   :  { %s63_s12 = sshll.u32 %s1180_s11, 4  ;;  %s1181_s15 = smov 64   ;;  %s64_s12 = int_to_ptr.vmem [resolvable:$true] %s63_s12 }
   0x9   :  { %s1182_s16 = smov 4   ;;  %s46_s19 = sshll.u32 %s1417_s2, 4  ;;  %s47_s19 = int_to_ptr.hbm [resolvable:$true] %s46_s19 }
   0xa   :  { %69 = dma.hbm_to_vmem [thread:$0]  %s62_s10, 256, %s64_s12, [#allocation9], %s1181_s15, %s1181_s15, %s1182_s16  }
   0xb   :  { %s1183_s20 = smov [#allocation2]   ;;  %s1184_s4 = smov [#allocation7]  }
   0xc   :  { %s22_s21 = sshll.u32 %s1183_s20, 4  ;;  %s48_s22 = sshll.u32 %s1184_s4, 4  ;;  %s23_s21 = int_to_ptr.vmem [resolvable:$true] %s22_s21  ;;  %s49_s22 = int_to_ptr.vmem [resolvable:$true] %s48_s22 }
   0xd   :  { %28 = dma.hbm_to_vmem [thread:$0]  %s21_s1, 256, %s23_s21, [#allocation3], %s1178_s29, %s1178_s29, %s1179_s30  }
   0xe   :  { %s74_s24 = sshll.u32 %s1420_s5, 4  ;;  %s1185_s25 = smov [#allocation10]   ;;  %s75_s24 = int_to_ptr.hbm [resolvable:$true] %s74_s24 }
   0xf   :  { %54 = dma.hbm_to_vmem [thread:$0]  %s47_s19, 256, %s49_s22, [#allocation6], %s1181_s15, %s1181_s15, %s1182_s16  }
  0x10   :  { %s76_s26 = sshll.u32 %s1185_s25, 4  ;;  %s77_s26 = int_to_ptr.vmem [resolvable:$true] %s76_s26 }
  0x11   :  { %82 = dma.hbm_to_vmem [thread:$0]  %s75_s24, 256, %s77_s26, [#allocation9], %s1181_s15, %s1181_s15, %s1182_s16  }
  0x12   :  { %1169 = dma.done.wait [#allocation3], 256  }
  0x13   :  { %1170 = vsyncadd [#allocation3], 4294967040 }
  0x14   :  { %1171 = dma.done.wait [#allocation6], 512  }
  0x15   :  { %1172 = vsyncadd [#allocation6], 4294966784 }
  0x16   :  { %1173 = dma.done.wait [#allocation9], 512  }
  0x17   :  { %1174 = vsyncadd [#allocation9], 4294966784  ;;  %v965_v0 = vld [vmem:[#allocation7 + $0x8] sm:$0xff]  ;;  %v1256_v1 = vld [vmem:[#allocation2] sm:$0xff]  ;;  %vm135_vm0 = vcmask 261120   ;;  %s1186_s27 = smov 120  }
  0x18   :  { %v1258_v2 = vld [vmem:[#allocation2 + $0x8] sm:$0xff]  ;;  %v108_v3 = vld [vmem:[#allocation5] sm:$0xff]  ;;  %v109_v4 = vld [vmem:[#allocation5 + $0x8] sm:$0xff]  ;;  %145 = vmatpush.bf16.msra.mxu0 %v965_v0  ;;  %s1187_s28 = smov 96   ;;  %s1190_s10 = smov 112   ;;  %vm196_vm1 = vcmask 64512  }
  0x19   :  { %v964_v5 = vld [vmem:[#allocation7] sm:$0xff]  ;;  %v110_v6 = vadd.f32 %v108_v3, %v1256_v1  ;;  %v111_v7 = vadd.f32 %v109_v4, %v1258_v2  ;;  %v967_v8 = vld [vmem:[#allocation8 + $0x8] sm:$0xff]  ;;  %v966_v9 = vld [vmem:[#allocation8] sm:$0xff]  ;;  %v114_v11 = vpack.c.bf16 %v1258_v2, %v1256_v1  ;;  %vm263_vm2 = vcmask 1043456   ;;  %s1191_s11 = smov 72   ;;  %s1192_s12 = smov 104  }
  0x1a   :  { %179 = vmatpush.bf16.msra.mxu1 %v967_v8  ;;  %v986_v12 = vld [vmem:[%s1418_s3] ss:$0 sm:$0xff]  ;;  %s1188_s3 = smov 88   ;;  %s1194_s13 = smov [#allocation11]  }
  0x1b   :  { %v113_v10 = vpack.c.bf16 %v111_v7, %v110_v6  ;;  %v1277_v20 = vld [vmem:[%s1421_s6] sm:$0xf]  ;;  %s1189_s6 = smov 80   ;;  %s909_s14 = sshll.u32 %s1194_s13, 4  ;;  %s910_s14 = int_to_ptr.vmem [resolvable:$true] %s909_s14 }
  0x1c   :  { %146 = vmatpush.bf16.msra.mxu0 %v964_v5  ;;  %v157_v23 = vperm.slane %v1277_v20, 0  ;;  %s911_s16 = sshll.u32 %s1422_s7, 4  ;;  %s912_s16 = int_to_ptr.hbm [resolvable:$true] %s911_s16 }
  0x1e   :  { %180 = vmatpush.bf16.msra.mxu1 %v966_v9 }
  0x1f   :  { %934 = vmatmul.msk.bf16.vlgmr.msra.gmra.mxu0 %vm135_vm0, %v113_v10 }
  0x21   :  { %943 = vmatmul.msk.bf16.vlgmr.msra.gmra.mxu1 %vm135_vm0, %v114_v11 }
  0x9c   :  { %v148_v13 = vpop.f32.mrf.mxu0 }
  0x9d   :  { %v149_v14 = vadd.f32 %v986_v12, %v148_v13 }
  0x9e   :  { %v182_v24 = vpop.f32.mrf.mxu1 }
  0x9f   :  { %v187_v15 = vpack.c.bf16 %v149_v14, %v149_v14  ;;  %v183_v26 = vadd.f32 %v182_v24, %v157_v23 }
  0xa1   :  { %v192_v16 = vunpack.c.l.b16 %v187_v15  ;;  %v189_v27 = vpack.c.bf16 %v183_v26, %v183_v26 }
  0xa3   :  { %v1269_v17 = vpack.c.b16 %v192_v16, %v192_v16  ;;  %v398_v28 = vunpack.c.l.b16 %v189_v27  ;;  %v265_v47 = vsel %vm263_vm2, %v189_v27, 0 }
  0xa4   :  { %v150_v18 = vpop.f32.mrf.mxu0  ;;  %274 = vmatpush.bf16.msrb.mxu0 %v265_v47 }
  0xa5   :  { %v151_v19 = vadd.f32 %v986_v12, %v150_v18  ;;  %331 = vrot.lane.b32.xlu1 %v1269_v17, %s1186_s27  ;;  %194 = vrot.lane.b32.xlu0 %v1269_v17, %s1187_s28  ;;  %v1287_v29 = vpack.c.b16 %v398_v28, %v398_v28 }
  0xa6   :  { %v184_v40 = vpop.f32.mrf.mxu1 }
  0xa7   :  { %v188_v21 = vpack.c.bf16 %v151_v19, %v151_v19  ;;  %v185_v41 = vadd.f32 %v184_v40, %v157_v23 }
  0xa9   :  { %v217_v22 = vunpack.c.l.b16 %v188_v21  ;;  %v190_v43 = vpack.c.bf16 %v185_v41, %v185_v41 }
  0xab   :  { %v1280_v25 = vpack.c.b16 %v217_v22, %v217_v22  ;;  %v284_v48 = vsel %vm263_vm2, %v190_v43, 0  ;;  %v422_v59 = vunpack.c.l.b16 %v190_v43 }
  0xac   :  { %293 = vmatpush.bf16.msrb.mxu1 %v284_v48 }
  0xad   :  { %356 = vrot.lane.b32.xlu2 %v1280_v25, %s1188_s3  ;;  %219 = vrot.lane.b32.xlu1 %v1280_v25, %s1187_s28  ;;  %v1312_v60 = vpack.c.b16 %v422_v59, %v422_v59 }
  0xae   :  { %333 = vrot.lane.b32.xlu0 %v1269_v17, %s1188_s3 }
  0xb5   :  { %354 = vrot.lane.b32.xlu2 %v1280_v25, %s1186_s27 }
  0xbd   :  { %400 = vrot.lane.b32.xlu2 %v1287_v29, %s1186_s27 }
  0xc5   :  { %519 = vrot.lane.b32.xlu2 %v1269_v17, %s1189_s6 }
  0xcd   :  { %517 = vrot.lane.b32.xlu2 %v1269_v17, %s1190_s10 }
 0x107   :  { %v357_v33 = vpop.permute.xlu2 %356 }
 0x108   :  { %v362_v38 = vsel %vm196_vm1, %v357_v33, 0 }
 0x10f   :  { %v355_v39 = vpop.permute.xlu2 %354 }
 0x117   :  { %v332_v30 = vpop.permute.xlu1 %331  ;;  %v195_v31 = vpop.permute.xlu0 %194 }
 0x118   :  { %v201_v32 = vsel %vm196_vm1, %v195_v31, 0  ;;  %v401_v42 = vpop.permute.xlu2 %400 }
 0x119   :  { %210 = vmatpush.bf16.xpose.msra.mxu2 %v201_v32  ;;  %v406_v44 = vsel %vm263_vm2, %v401_v42, 0 }
 0x11a   :  { %415 = vmatpush.bf16.msra.mxu0 %v406_v44 }
 0x11f   :  { %v220_v34 = vpop.permute.xlu1 %219 }
 0x120   :  { %v334_v35 = vpop.permute.xlu0 %333  ;;  %v225_v36 = vsel %vm196_vm1, %v220_v34, 0  ;;  %944 = vmatmul.msk.bf16.vlgmr.msra.gmra.mxu2 %vm196_vm1, %v187_v15  ;;  %v520_v61 = vpop.permute.xlu2 %519 }
 0x121   :  { %234 = vmatpush.bf16.xpose.msra.mxu3 %v225_v36  ;;  %v339_v37 = vsel %vm196_vm1, %v334_v35, 0  ;;  %v525_v9 = vsel %vm196_vm1, %v520_v61, 0  ;;  %v476_v35 = vld [vmem:[#allocation10 + $0x4] sm:$0xf] }
 0x122   :  { %348 = vmatpush.bf16.xpose.msrb.mxu2 %v339_v37  ;;  %v481_v36 = vsel %vm263_vm2, %v476_v35, 0 }
 0x128   :  { %945 = vmatmul.msk.bf16.vlgmr.msra.gmra.mxu3 %vm196_vm1, %v188_v21  ;;  %v518_v62 = vpop.permute.xlu2 %517 }
 0x129   :  { %371 = vmatpush.bf16.xpose.msrb.mxu3 %v362_v38 }
 0x12a   :  { %490 = vmatpush.bf16.msra.mxu2 %v481_v36 }
 0x130   :  { %948 = vmatmul.msk.bf16.vlgmr.msrb.gmra.mxu2 %vm196_vm1, %v332_v30 }
 0x138   :  { %949 = vmatmul.msk.bf16.vlgmr.msrb.gmra.mxu3 %vm196_vm1, %v355_v39 }
 0x1a3   :  { %v212_v45 = vpop.f32.mrf.mxu2 }
 0x1a4   :  { %v240_v46 = vsel %vm196_vm1, %v212_v45, -inf }
 0x1a5   :  { %241 = vmax.xlane.f32.xlu0 %v240_v46 }
 0x1ab   :  { %v236_v49 = vpop.f32.mrf.mxu3  ;;  %v214_v50 = vpop.f32.mrf.mxu2 }
 0x1ac   :  { %v243_v51 = vsel %vm196_vm1, %v236_v49, -inf }
 0x1ad   :  { %244 = vmax.xlane.f32.xlu2 %v243_v51 }
 0x1b3   :  { %v238_v52 = vpop.f32.mrf.mxu3  ;;  %v350_v53 = vpop.f32.mrf.mxu2 }
 0x1b4   :  { %v377_v54 = vsel %vm196_vm1, %v350_v53, -inf }
 0x1b5   :  { %378 = vmax.xlane.f32.xlu1 %v377_v54 }
 0x1bb   :  { %v373_v55 = vpop.f32.mrf.mxu3  ;;  %v352_v56 = vpop.f32.mrf.mxu2 }
 0x1bc   :  { %v380_v57 = vsel %vm196_vm1, %v373_v55, -inf }
 0x1bd   :  { %381 = vmax.xlane.f32.xlu0 %v380_v57 }
 0x1c3   :  { %v375_v58 = vpop.f32.mrf.mxu3 }
 0x1c5   :  { %540 = vrot.lane.b32.xlu2 %v1280_v25, %s1190_s10 }
 0x1cd   :  { %704 = vrot.lane.b32.xlu2 %v1280_v25, %s1191_s11 }
 0x1ce   :  { %424 = vrot.lane.b32.xlu1 %v1312_v60, %s1186_s27 }
 0x1d1   :  { %542 = vrot.lane.b32.xlu0 %v1280_v25, %s1189_s6 }
 0x1d5   :  { %679 = vrot.lane.b32.xlu2 %v1269_v17, %s1192_s12 }
 0x218   :  { %v242_v63 = vpop.xlane.xlu0 %241 }
 0x219   :  { %v246_v0 = vsub.f32 %v212_v45, %v242_v63 }
 0x21b   :  { %v248_v3 = vmul.f32 1.442695, %v246_v0 }
 0x21d   :  { %987 = vpow2.f32 %v248_v3 }
 0x220   :  { %v245_v4 = vpop.xlane.xlu2 %244 }
 0x221   :  { %v247_v5 = vsub.f32 %v236_v49, %v245_v4 }
 0x223   :  { %v250_v6 = vmul.f32 1.442695, %v247_v5  ;;  %v988_v7 = vpop.eup %987 }
 0x224   :  { %v258_v8 = vpack.c.bf16 %v988_v7, %v988_v7  ;;  %v252_v34 = vsel %vm196_vm1, %v988_v7, 0.0 }
 0x225   :  { %989 = vpow2.f32 %v250_v6 }
 0x226   :  { %946 = vmatmul.msk.bf16.vlgmr.msrb.gmra.mxu0 %vm196_vm1, %v258_v8 }
 0x227   :  { %534 = vmatpush.bf16.xpose.msrb.mxu0 %v525_v9 }
 0x228   :  { %v379_v10 = vpop.xlane.xlu1 %378  ;;  %v541_v32 = vpop.permute.xlu2 %540 }
 0x229   :  { %v383_v11 = vsub.f32 %v350_v53, %v379_v10 }
 0x22b   :  { %v990_v12 = vpop.eup %989  ;;  %v385_v13 = vmul.f32 1.442695, %v383_v11 }
 0x22c   :  { %v259_v14 = vpack.c.bf16 %v990_v12, %v990_v12  ;;  %v255_v33 = vsel %vm196_vm1, %v990_v12, 0.0 }
 0x22d   :  { %991 = vpow2.f32 %v385_v13 }
 0x22e   :  { %947 = vmatmul.msk.bf16.vlgmr.msrb.gmra.mxu1 %vm196_vm1, %v259_v14 }
 0x230   :  { %v382_v15 = vpop.xlane.xlu0 %381  ;;  %v705_v63 = vpop.permute.xlu2 %704 }
 0x231   :  { %v384_v16 = vsub.f32 %v373_v55, %v382_v15  ;;  %v710_v14 = vsel %vm196_vm1, %v705_v63, 0 }
 0x233   :  { %v387_v18 = vmul.f32 1.442695, %v384_v16  ;;  %v992_v19 = vpop.eup %991 }
 0x234   :  { %v395_v21 = vpack.c.bf16 %v992_v19, %v992_v19  ;;  %v389_v22 = vsel %vm196_vm1, %v992_v19, 0.0 }
 0x235   :  { %993 = vpow2.f32 %v387_v18  ;;  %390 = vadd.xlane.f32.xlu1 %v389_v22  ;;  %v330_v22 = vld [vmem:[#allocation10] sm:$0xf] }
 0x236   :  { %950 = vmatmul.msk.bf16.vlgmr.msra.gmra.mxu0 %vm196_vm1, %v395_v21 }
 0x238   :  { %v680_v15 = vpop.permute.xlu2 %679 }
 0x23b   :  { %v994_v23 = vpop.eup %993 }
 0x23c   :  { %v392_v24 = vsel %vm196_vm1, %v994_v23, 0.0  ;;  %v396_v30 = vpack.c.bf16 %v994_v23, %v994_v23  ;;  %v501_v23 = vsel %vm263_vm2, %v330_v22, 0 }
 0x23d   :  { %393 = vadd.xlane.f32.xlu0 %v392_v24  ;;  %510 = vmatpush.bf16.msra.mxu3 %v501_v23 }
 0x240   :  { %v425_v26 = vpop.permute.xlu1 %424 }
 0x241   :  { %v430_v27 = vsel %vm263_vm2, %v425_v26, 0 }
 0x242   :  { %439 = vmatpush.bf16.msra.mxu1 %v430_v27 }
 0x243   :  { %v543_v28 = vpop.permute.xlu0 %542 }
 0x244   :  { %v548_v31 = vsel %vm196_vm1, %v543_v28, 0 }
 0x245   :  { %951 = vmatmul.msk.bf16.vlgmr.msra.gmra.mxu1 %vm196_vm1, %v396_v30 }
 0x246   :  { %557 = vmatpush.bf16.xpose.msrb.mxu1 %v548_v31  ;;  %954 = vmatmul.msk.bf16.vlgmr.msrb.gmra.mxu0 %vm196_vm1, %v518_v62 }
 0x24e   :  { %583 = vrot.lane.b32.xlu1 %v1287_v29, %s1190_s10 }
 0x251   :  { %681 = vrot.lane.b32.xlu0 %v1269_v17, %s1191_s11 }
 0x255   :  { %955 = vmatmul.msk.bf16.vlgmr.msrb.gmra.mxu1 %vm196_vm1, %v541_v32 }
 0x278   :  { %256 = vadd.xlane.f32.xlu1 %v255_v33 }
 0x27b   :  { %253 = vadd.xlane.f32.xlu0 %v252_v34 }
 0x28f   :  { %604 = vrot.lane.b32.xlu0 %v1312_v60, %s1190_s10 }
 0x2a3   :  { %v1342_v37 = vpop.f32.mrf.mxu0 }
 0x2a8   :  { %v391_v38 = vpop.xlane.xlu1 %390 }
 0x2a9   :  { %995 = vrcp.f32 %v391_v38  ;;  %vm450_vm4 = vweird.f32 %v391_v38  ;;  %v456_v51 = vand.u32 2147483648, %v391_v38  ;;  %v454_v53 = vand.u32 2147483647, %v391_v38 }
 0x2ab   :  { %v1344_v17 = vpop.f32.mrf.mxu1  ;;  %v278_v39 = vpop.f32.mrf.mxu0  ;;  %v457_v59 = vor.u32 1.1754944e-38, %v456_v51  ;;  %vm455_vm9 = vcmp.eq.f32.partialorder %v454_v53, 8.507059e+37 }
 0x2af   :  { %v996_v40 = vpop.eup %995 }
 0x2b0   :  { %v394_v41 = vpop.xlane.xlu0 %393  ;;  %v446_v42 = vmul.f32 %v996_v40, %v391_v38  ;;  %vm451_vm3 = vweird.f32 %v996_v40 }
 0x2b1   :  { %997 = vrcp.f32 %v394_v41  ;;  %v471_v52 = vand.u32 2147483648, %v394_v41  ;;  %v469_v56 = vand.u32 2147483647, %v394_v41  ;;  %vm452_vm6 = vmor %vm450_vm4, %vm451_vm3  ;;  %vm465_vm7 = vweird.f32 %v394_v41 }
 0x2b2   :  { %v447_v43 = vsub.f32 1.0, %v446_v42 }
 0x2b3   :  { %v297_v44 = vpop.f32.mrf.mxu1  ;;  %v417_v45 = vpop.f32.mrf.mxu0  ;;  %v472_v61 = vor.u32 1.1754944e-38, %v471_v52  ;;  %vm470_vm10 = vcmp.eq.f32.partialorder %v469_v56, 8.507059e+37 }
 0x2b4   :  { %v448_v46 = vmul.f32 %v996_v40, %v447_v43 }
 0x2b6   :  { %v449_v50 = vadd.f32 %v996_v40, %v448_v46 }
 0x2b7   :  { %v998_v47 = vpop.eup %997 }
 0x2b8   :  { %v461_v48 = vmul.f32 %v998_v47, %v394_v41  ;;  %vm466_vm5 = vweird.f32 %v998_v47  ;;  %v453_v57 = vsel %vm452_vm6, %v996_v40, %v449_v50 }
 0x2b9   :  { %vm467_vm8 = vmor %vm465_vm7, %vm466_vm5  ;;  %v458_v0 = vsel %vm455_vm9, %v457_v59, %v453_v57 }
 0x2ba   :  { %v462_v49 = vsub.f32 1.0, %v461_v48  ;;  %v459_v8 = vmul.f32 %v458_v0, %v417_v45 }
 0x2bb   :  { %v419_v54 = vpop.f32.mrf.mxu0 }
 0x2bc   :  { %v463_v55 = vmul.f32 %v998_v47, %v462_v49 }
 0x2be   :  { %v464_v58 = vadd.f32 %v998_v47, %v463_v55 }
 0x2c0   :  { %v468_v62 = vsel %vm467_vm8, %v998_v47, %v464_v58  ;;  %v584_v3 = vpop.permute.xlu1 %583 }
 0x2c1   :  { %v473_v4 = vsel %vm470_vm10, %v472_v61, %v468_v62  ;;  %v589_v5 = vsel %vm263_vm2, %v584_v3, 0 }
 0x2c2   :  { %v441_v6 = vpop.f32.mrf.mxu1  ;;  %598 = vmatpush.bf16.msrb.mxu2 %v589_v5 }
 0x2c3   :  { %v682_v7 = vpop.permute.xlu0 %681  ;;  %v474_v9 = vmul.f32 %v473_v4, %v441_v6  ;;  %v1347_v10 = vpop.f32.mrf.mxu0 }
 0x2c4   :  { %v687_v11 = vsel %vm196_vm1, %v682_v7, 0  ;;  %v563_v12 = vsel %vm196_vm1, %v1347_v10, -inf }
 0x2c5   :  { %696 = vmatpush.bf16.xpose.msra.mxu1 %v687_v11  ;;  %v475_v13 = vpack.c.bf16 %v474_v9, %v459_v8  ;;  %564 = vmax.xlane.f32.xlu2 %v563_v12 }
 0x2c7   :  { %952 = vmatmul.msk.bf16.vlgmr.msra.gmra.mxu2 %vm196_vm1, %v475_v13 }
 0x2c8   :  { %719 = vmatpush.bf16.xpose.msra.mxu2 %v710_v14 }
 0x2ca   :  { %v443_v16 = vpop.f32.mrf.mxu1 }
 0x2cb   :  { %v538_v18 = vpop.f32.mrf.mxu0 }
 0x2cc   :  { %959 = vmatmul.msk.bf16.vlgmr.msra.gmra.mxu1 %vm196_vm1, %v680_v15 }
 0x2d2   :  { %v1355_v19 = vpop.f32.mrf.mxu1 }
 0x2d3   :  { %v566_v53 = vsel %vm196_vm1, %v1355_v19, -inf }
 0x2da   :  { %v561_v21 = vpop.f32.mrf.mxu1 }
 0x2dd   :  { %702 = vrot.lane.b32.xlu2 %v1280_v25, %s1192_s12 }
 0x2eb   :  { %v257_v24 = vpop.xlane.xlu1 %256 }
 0x2ec   :  { %999 = vrcp.f32 %v257_v24  ;;  %v325_v33 = vand.u32 2147483648, %v257_v24  ;;  %v323_v35 = vand.u32 2147483647, %v257_v24  ;;  %vm319_vm12 = vweird.f32 %v257_v24 }
 0x2ee   :  { %v254_v26 = vpop.xlane.xlu0 %253  ;;  %v326_v41 = vor.u32 1.1754944e-38, %v325_v33  ;;  %vm324_vm15 = vcmp.eq.f32.partialorder %v323_v35, 8.507059e+37 }
 0x2ef   :  { %1001 = vrcp.f32 %v254_v26  ;;  %v310_v25 = vand.u32 2147483648, %v254_v26  ;;  %v308_v40 = vand.u32 2147483647, %v254_v26  ;;  %vm304_vm3 = vweird.f32 %v254_v26 }
 0x2f1   :  { %v311_v45 = vor.u32 1.1754944e-38, %v310_v25  ;;  %vm309_vm5 = vcmp.eq.f32.partialorder %v308_v40, 8.507059e+37 }
 0x2f2   :  { %v1000_v27 = vpop.eup %999 }
 0x2f3   :  { %v315_v28 = vmul.f32 %v1000_v27, %v257_v24  ;;  %vm320_vm11 = vweird.f32 %v1000_v27 }
 0x2f4   :  { %vm321_vm14 = vmor %vm319_vm12, %vm320_vm11 }
 0x2f5   :  { %v1002_v30 = vpop.eup %1001  ;;  %v316_v31 = vsub.f32 1.0, %v315_v28 }
 0x2f6   :  { %v300_v32 = vmul.f32 %v1002_v30, %v254_v26  ;;  %vm305_vm13 = vweird.f32 %v1002_v30 }
 0x2f7   :  { %v317_v34 = vmul.f32 %v1000_v27, %v316_v31  ;;  %vm306_vm4 = vmor %vm304_vm3, %vm305_vm13 }
 0x2f8   :  { %v301_v36 = vsub.f32 1.0, %v300_v32 }
 0x2f9   :  { %v318_v38 = vadd.f32 %v1000_v27, %v317_v34 }
 0x2fa   :  { %v302_v39 = vmul.f32 %v1002_v30, %v301_v36 }
 0x2fb   :  { %v322_v42 = vsel %vm321_vm14, %v1000_v27, %v318_v38 }
 0x2fc   :  { %v303_v43 = vadd.f32 %v1002_v30, %v302_v39  ;;  %v327_v44 = vsel %vm324_vm15, %v326_v41, %v322_v42 }
 0x2fd   :  { %v328_v48 = vmul.f32 %v327_v44, %v1344_v17 }
 0x2fe   :  { %v307_v46 = vsel %vm306_vm4, %v1002_v30, %v303_v43 }
 0x2ff   :  { %v312_v47 = vsel %vm309_vm5, %v311_v45, %v307_v46 }
 0x300   :  { %v313_v49 = vmul.f32 %v312_v47, %v1342_v37 }
 0x301   :  { %v605_v50 = vpop.permute.xlu0 %604 }
 0x302   :  { %v610_v51 = vsel %vm263_vm2, %v605_v50, 0  ;;  %v329_v52 = vpack.c.bf16 %v328_v48, %v313_v49 }
 0x303   :  { %619 = vmatpush.bf16.msrb.mxu3 %v610_v51 }
 0x304   :  { %953 = vmatmul.msk.bf16.vlgmr.msra.gmra.mxu3 %vm196_vm1, %v329_v52 }
 0x306   :  { %567 = vmax.xlane.f32.xlu2 %v566_v53 }
 0x31e   :  { %766 = vrot.lane.b32.xlu2 %v1312_v60, %s1192_s12  ;;  %v656_v60 = vld [vmem:[#allocation10 + $0x8] sm:$0xf] }
 0x31f   :  { %v661_v63 = vsel %vm263_vm2, %v656_v60, 0 }
 0x320   :  { %670 = vmatpush.bf16.msra.mxu0 %v661_v63 }
 0x338   :  { %v565_v54 = vpop.xlane.xlu2 %564 }
 0x339   :  { %v569_v55 = vsub.f32 %v1347_v10, %v565_v54 }
 0x33b   :  { %v571_v17 = vmul.f32 1.442695, %v569_v55 }
 0x33d   :  { %1003 = vpow2.f32 %v571_v17 }
 0x340   :  { %v703_v62 = vpop.permute.xlu2 %702 }
 0x343   :  { %v1004_v37 = vpop.eup %1003 }
 0x344   :  { %v581_v56 = vpack.c.bf16 %v1004_v37, %v1004_v37  ;;  %v575_v61 = vsel %vm196_vm1, %v1004_v37, 0.0 }
 0x346   :  { %956 = vmatmul.msk.bf16.vlgmr.msrb.gmra.mxu2 %vm196_vm1, %v581_v56 }
 0x349   :  { %v698_v57 = vpop.f32.mrf.mxu1 }
 0x34a   :  { %v725_v58 = vsel %vm196_vm1, %v698_v57, -inf  ;;  %v492_v10 = vpop.f32.mrf.mxu2 }
 0x34b   :  { %726 = vmax.xlane.f32.xlu1 %v725_v58 }
 0x351   :  { %v700_v59 = vpop.f32.mrf.mxu1 }
 0x352   :  { %v1382_v16 = vpop.f32.mrf.mxu2 }
 0x353   :  { %576 = vadd.xlane.f32.xlu1 %v575_v61 }
 0x356   :  { %960 = vmatmul.msk.bf16.vlgmr.msra.gmra.mxu2 %vm196_vm1, %v703_v62 }
 0x379   :  { %v568_v0 = vpop.xlane.xlu2 %567 }
 0x37a   :  { %v570_v3 = vsub.f32 %v1355_v19, %v568_v0 }
 0x37c   :  { %v573_v4 = vmul.f32 1.442695, %v570_v3 }
 0x37e   :  { %1005 = vpow2.f32 %v573_v4  ;;  %v818_v4 = vld [vmem:[#allocation10 + $0xc] sm:$0xf] }
 0x381   :  { %v767_v5 = vpop.permute.xlu2 %766 }
 0x382   :  { %v772_v6 = vsel %vm263_vm2, %v767_v5, 0  ;;  %v823_v5 = vsel %vm263_vm2, %v818_v4, 0 }
 0x383   :  { %781 = vmatpush.bf16.msrb.mxu0 %v772_v6  ;;  %832 = vmatpush.bf16.msrb.mxu1 %v823_v5 }
 0x384   :  { %v1006_v7 = vpop.eup %1005 }
 0x385   :  { %v582_v8 = vpack.c.bf16 %v1006_v7, %v1006_v7  ;;  %v578_v9 = vsel %vm196_vm1, %v1006_v7, 0.0 }
 0x386   :  { %579 = vadd.xlane.f32.xlu1 %v578_v9 }
 0x387   :  { %v512_v11 = vpop.f32.mrf.mxu3  ;;  %957 = vmatmul.msk.bf16.vlgmr.msrb.gmra.mxu3 %vm196_vm1, %v582_v8 }
 0x388   :  { %v1377_v12 = vadd.f32 %v512_v11, %v492_v10 }
 0x38f   :  { %v1386_v36 = vpop.f32.mrf.mxu3 }
 0x39f   :  { %745 = vrot.lane.b32.xlu1 %v1287_v29, %s1192_s12 }
 0x3be   :  { %v727_v13 = vpop.xlane.xlu1 %726 }
 0x3bf   :  { %v731_v14 = vsub.f32 %v698_v57, %v727_v13 }
 0x3c1   :  { %v733_v15 = vmul.f32 1.442695, %v731_v14 }
 0x3c3   :  { %1007 = vpow2.f32 %v733_v15 }
 0x3c6   :  { %v577_v27 = vpop.xlane.xlu1 %576 }
 0x3c7   :  { %1009 = vrcp.f32 %v577_v27  ;;  %v636_v25 = vand.u32 2147483648, %v577_v27  ;;  %vm630_vm7 = vweird.f32 %v577_v27  ;;  %v634_v38 = vand.u32 2147483647, %v577_v27 }
 0x3c9   :  { %v1008_v18 = vpop.eup %1007  ;;  %v600_v19 = vpop.f32.mrf.mxu2  ;;  %v637_v44 = vor.u32 1.1754944e-38, %v636_v25  ;;  %vm635_vm10 = vcmp.eq.f32.partialorder %v634_v38, 8.507059e+37 }
 0x3ca   :  { %v737_v21 = vsel %vm196_vm1, %v1008_v18, 0.0  ;;  %v743_v37 = vpack.c.bf16 %v1008_v18, %v1008_v18 }
 0x3cb   :  { %738 = vadd.xlane.f32.xlu1 %v737_v21 }
 0x3cd   :  { %v1010_v29 = vpop.eup %1009 }
 0x3ce   :  { %v626_v28 = vmul.f32 %v1010_v29, %v577_v27  ;;  %vm631_vm6 = vweird.f32 %v1010_v29 }
 0x3cf   :  { %vm632_vm8 = vmor %vm630_vm7, %vm631_vm6 }
 0x3d0   :  { %v627_v30 = vsub.f32 1.0, %v626_v28 }
 0x3d1   :  { %v602_v22 = vpop.f32.mrf.mxu2 }
 0x3d2   :  { %v628_v32 = vmul.f32 %v1010_v29, %v627_v30 }
 0x3d4   :  { %v629_v34 = vadd.f32 %v1010_v29, %v628_v32 }
 0x3d6   :  { %v633_v41 = vsel %vm632_vm8, %v1010_v29, %v629_v34 }
 0x3d7   :  { %v638_v46 = vsel %vm635_vm10, %v637_v44, %v633_v41 }
 0x3d8   :  { %v639_v51 = vmul.f32 %v638_v46, %v600_v19 }
 0x3d9   :  { %v721_v23 = vpop.f32.mrf.mxu2 }
 0x3da   :  { %v728_v24 = vsel %vm196_vm1, %v721_v23, -inf }
 0x3db   :  { %729 = vmax.xlane.f32.xlu0 %v728_v24 }
 0x3e1   :  { %v723_v26 = vpop.f32.mrf.mxu2 }
 0x3f9   :  { %v580_v31 = vpop.xlane.xlu1 %579 }
 0x3fa   :  { %1011 = vrcp.f32 %v580_v31  ;;  %v651_v40 = vand.u32 2147483648, %v580_v31  ;;  %v649_v43 = vand.u32 2147483647, %v580_v31  ;;  %vm645_vm11 = vweird.f32 %v580_v31 }
 0x3fc   :  { %v652_v47 = vor.u32 1.1754944e-38, %v651_v40  ;;  %vm650_vm13 = vcmp.eq.f32.partialorder %v649_v43, 8.507059e+37  ;;  %v515_v43 = vadd.f32 %v1386_v36, %v1382_v16 }
 0x400   :  { %v1012_v33 = vpop.eup %1011 }
 0x401   :  { %v641_v35 = vmul.f32 %v1012_v33, %v580_v31  ;;  %vm646_vm9 = vweird.f32 %v1012_v33 }
 0x402   :  { %vm647_vm12 = vmor %vm645_vm11, %vm646_vm9 }
 0x403   :  { %v642_v39 = vsub.f32 1.0, %v641_v35 }
 0x405   :  { %v643_v42 = vmul.f32 %v1012_v33, %v642_v39  ;;  %v841_v39 = vperm.slane %v1277_v20, 1 }
 0x407   :  { %v644_v45 = vadd.f32 %v1012_v33, %v643_v42 }
 0x409   :  { %v648_v48 = vsel %vm647_vm12, %v1012_v33, %v644_v45 }
 0x40a   :  { %v621_v49 = vpop.f32.mrf.mxu3  ;;  %v653_v50 = vsel %vm650_vm13, %v652_v47, %v648_v48 }
 0x40b   :  { %v654_v52 = vmul.f32 %v653_v50, %v621_v49 }
 0x40d   :  { %v655_v53 = vpack.c.bf16 %v654_v52, %v639_v51  ;;  %v1193_v52 = vmov 32.0  }
 0x40f   :  { %958 = vmatmul.msk.bf16.vlgmr.msra.gmra.mxu0 %vm196_vm1, %v655_v53 }
 0x411   :  { %v746_v54 = vpop.permute.xlu1 %745 }
 0x412   :  { %v751_v55 = vsel %vm263_vm2, %v746_v54, 0  ;;  %v623_v17 = vpop.f32.mrf.mxu3 }
 0x413   :  { %760 = vmatpush.bf16.msra.mxu3 %v751_v55 }
 0x416   :  { %961 = vmatmul.msk.bf16.vlgmr.msra.gmra.mxu3 %vm196_vm1, %v743_v37 }
 0x43e   :  { %v739_v6 = vpop.xlane.xlu1 %738 }
 0x43f   :  { %vm792_vm15 = vweird.f32 %v739_v6  ;;  %v798_v19 = vand.u32 2147483648, %v739_v6 }
 0x441   :  { %v799_v28 = vor.u32 1.1754944e-38, %v798_v19 }
 0x44e   :  { %v730_v56 = vpop.xlane.xlu0 %729 }
 0x44f   :  { %v732_v57 = vsub.f32 %v721_v23, %v730_v56  ;;  %v796_v23 = vand.u32 2147483647, %v739_v6 }
 0x451   :  { %v735_v58 = vmul.f32 1.442695, %v732_v57  ;;  %vm797_vm6 = vcmp.eq.f32.partialorder %v796_v23, 8.507059e+37 }
 0x453   :  { %1013 = vpow2.f32 %v735_v58 }
 0x454   :  { %1015 = vrcp.f32 %v739_v6 }
 0x459   :  { %v1014_v59 = vpop.eup %1013 }
 0x45a   :  { %v744_v61 = vpack.c.bf16 %v1014_v59, %v1014_v59  ;;  %v740_v62 = vsel %vm196_vm1, %v1014_v59, 0.0  ;;  %v1016_v7 = vpop.eup %1015 }
 0x45b   :  { %741 = vadd.xlane.f32.xlu2 %v740_v62  ;;  %v788_v8 = vmul.f32 %v1016_v7, %v739_v6  ;;  %vm793_vm14 = vweird.f32 %v1016_v7 }
 0x45c   :  { %962 = vmatmul.msk.bf16.vlgmr.msrb.gmra.mxu0 %vm196_vm1, %v744_v61  ;;  %vm794_vm3 = vmor %vm792_vm15, %vm793_vm14 }
 0x45d   :  { %v789_v10 = vsub.f32 1.0, %v788_v8 }
 0x45f   :  { %v790_v13 = vmul.f32 %v1016_v7, %v789_v10 }
 0x461   :  { %v791_v18 = vadd.f32 %v1016_v7, %v790_v13 }
 0x463   :  { %v795_v27 = vsel %vm794_vm3, %v1016_v7, %v791_v18  ;;  %v897_v18 = vperm.slane %v1277_v20, 2 }
 0x464   :  { %v800_v32 = vsel %vm797_vm6, %v799_v28, %v795_v27 }
 0x48c   :  { %v672_v60 = vpop.f32.mrf.mxu0 }
 0x48d   :  { %v677_v63 = vadd.f32 %v672_v60, %v1377_v12 }
 0x494   :  { %v674_v11 = vpop.f32.mrf.mxu0 }
 0x495   :  { %v678_v45 = vadd.f32 %v674_v11, %v515_v43 }
 0x499   :  { %v762_v0 = vpop.f32.mrf.mxu3 }
 0x49a   :  { %v801_v34 = vmul.f32 %v800_v32, %v762_v0 }
 0x4a1   :  { %v764_v3 = vpop.f32.mrf.mxu3 }
 0x4ce   :  { %v742_v9 = vpop.xlane.xlu2 %741 }
 0x4cf   :  { %1017 = vrcp.f32 %v742_v9  ;;  %v813_v21 = vand.u32 2147483648, %v742_v9  ;;  %v811_v26 = vand.u32 2147483647, %v742_v9  ;;  %vm807_vm4 = vweird.f32 %v742_v9 }
 0x4d0   :  { %1019 = vrcp.f32 %v1193_v52 }
 0x4d1   :  { %v814_v30 = vor.u32 1.1754944e-38, %v813_v21  ;;  %vm812_vm7 = vcmp.eq.f32.partialorder %v811_v26, 8.507059e+37  ;;  %v900_v21 = vperm.slane %v1277_v20, 3 }
 0x4d5   :  { %v1018_v14 = vpop.eup %1017 }
 0x4d6   :  { %v803_v15 = vmul.f32 %v1018_v14, %v742_v9  ;;  %vm808_vm2 = vweird.f32 %v1018_v14  ;;  %v1020_v53 = vpop.eup %1019 }
 0x4d7   :  { %vm809_vm5 = vmor %vm807_vm4, %vm808_vm2  ;;  %v853_v54 = vmul.f32 32.0, %v1020_v53 }
 0x4d8   :  { %v804_v12 = vsub.f32 1.0, %v803_v15 }
 0x4d9   :  { %v783_v22 = vpop.f32.mrf.mxu0  ;;  %v854_v55 = vsub.f32 1.0, %v853_v54 }
 0x4da   :  { %v805_v24 = vmul.f32 %v1018_v14, %v804_v12 }
 0x4db   :  { %v855_v16 = vmul.f32 %v1020_v53, %v854_v55 }
 0x4dc   :  { %v806_v29 = vadd.f32 %v1018_v14, %v805_v24 }
 0x4dd   :  { %v856_v36 = vadd.f32 %v1020_v53, %v855_v16 }
 0x4de   :  { %v810_v31 = vsel %vm809_vm5, %v1018_v14, %v806_v29 }
 0x4df   :  { %v815_v33 = vsel %vm812_vm7, %v814_v30, %v810_v31 }
 0x4e0   :  { %v816_v35 = vmul.f32 %v815_v33, %v783_v22 }
 0x4e1   :  { %v785_v25 = vpop.f32.mrf.mxu0 }
 0x4e2   :  { %v817_v38 = vpack.c.bf16 %v816_v35, %v801_v34 }
 0x4e4   :  { %963 = vmatmul.msk.bf16.vlgmr.msrb.gmra.mxu1 %vm196_vm1, %v817_v38  ;;  %vm857_vm1 = vweird.f32 %v1020_v53 }
 0x561   :  { %v834_v40 = vpop.f32.mrf.mxu1 }
 0x562   :  { %v839_v41 = vadd.f32 %v834_v40, %v677_v63 }
 0x564   :  { %v842_v42 = vadd.f32 %v841_v39, %v839_v41 }
 0x566   :  { %v844_v44 = vadd.f32 %v842_v42, %v1256_v1  ;;  %v858_v1 = vsel %vm857_vm1, %v1020_v53, %v856_v36 }
 0x568   :  { %v846_v46 = vsel %vm135_vm0, %v844_v44, 0.0 }
 0x569   :  { %847 = vadd.xlane.f32.xlu0 %v846_v46  ;;  %v836_v47 = vpop.f32.mrf.mxu1 }
 0x56a   :  { %v840_v48 = vadd.f32 %v836_v47, %v678_v45 }
 0x56c   :  { %v843_v49 = vadd.f32 %v841_v39, %v840_v48 }
 0x56e   :  { %v845_v50 = vadd.f32 %v843_v49, %v1258_v2 }
 0x570   :  { %v849_v51 = vsel %vm135_vm0, %v845_v50, 0.0 }
 0x571   :  { %850 = vadd.xlane.f32.xlu0 %v849_v51 }
 0x5dc   :  { %v848_v17 = vpop.xlane.xlu0 %847 }
 0x5dd   :  { %v859_v37 = vmul.f32 %v858_v1, %v848_v17 }
 0x5df   :  { %v861_v56 = vsub.f32 %v844_v44, %v859_v37 }
 0x5e1   :  { %v863_v57 = vmul.f32 %v861_v56, %v861_v56 }
 0x5e3   :  { %v865_v58 = vsel %vm135_vm0, %v863_v57, 0.0 }
 0x5e4   :  { %866 = vadd.xlane.f32.xlu0 %v865_v58  ;;  %v851_v2 = vpop.xlane.xlu0 %850 }
 0x5e5   :  { %v860_v59 = vmul.f32 %v858_v1, %v851_v2 }
 0x5e7   :  { %v862_v61 = vsub.f32 %v845_v50, %v860_v59 }
 0x5e9   :  { %v864_v62 = vmul.f32 %v862_v61, %v862_v61 }
 0x5eb   :  { %v868_v60 = vsel %vm135_vm0, %v864_v62, 0.0 }
 0x5ec   :  { %869 = vadd.xlane.f32.xlu0 %v868_v60 }
 0x657   :  { %v867_v63 = vpop.xlane.xlu0 %866 }
 0x658   :  { %v871_v0 = vmul.f32 %v867_v63, %v858_v1 }
 0x65a   :  { %v873_v3 = vadd.f32 1e-05, %v871_v0 }
 0x65c   :  { %1021 = vrsqrt.f32 %v873_v3  ;;  %vm881_vm9 = vweird.f32 %v873_v3 }
 0x65f   :  { %v870_v4 = vpop.xlane.xlu0 %869 }
 0x660   :  { %v872_v5 = vmul.f32 %v870_v4, %v858_v1 }
 0x662   :  { %v1022_v6 = vpop.eup %1021  ;;  %v874_v7 = vadd.f32 1e-05, %v872_v5 }
 0x663   :  { %v876_v8 = vmul.f32 %v1022_v6, %v873_v3  ;;  %vm882_vm8 = vweird.f32 %v1022_v6 }
 0x664   :  { %1023 = vrsqrt.f32 %v874_v7  ;;  %vm883_vm10 = vmor %vm881_vm9, %vm882_vm8  ;;  %vm891_vm12 = vweird.f32 %v874_v7 }
 0x665   :  { %v877_v9 = vmul.f32 %v1022_v6, %v876_v8 }
 0x667   :  { %v878_v10 = vmul.f32 0.5, %v877_v9 }
 0x669   :  { %v879_v11 = vsub.f32 1.5, %v878_v10 }
 0x66a   :  { %v1024_v13 = vpop.eup %1023 }
 0x66b   :  { %v880_v14 = vmul.f32 %v1022_v6, %v879_v11  ;;  %v886_v15 = vmul.f32 %v1024_v13, %v874_v7  ;;  %vm892_vm11 = vweird.f32 %v1024_v13 }
 0x66c   :  { %vm893_vm13 = vmor %vm891_vm12, %vm892_vm11 }
 0x66d   :  { %v884_v12 = vsel %vm883_vm10, %v1022_v6, %v880_v14  ;;  %v887_v19 = vmul.f32 %v1024_v13, %v886_v15 }
 0x66e   :  { %v895_v22 = vmul.f32 %v884_v12, %v861_v56 }
 0x66f   :  { %v888_v23 = vmul.f32 0.5, %v887_v19 }
 0x670   :  { %v898_v24 = vmul.f32 %v897_v18, %v895_v22 }
 0x671   :  { %v889_v26 = vsub.f32 1.5, %v888_v23 }
 0x672   :  { %v901_v27 = vadd.f32 %v900_v21, %v898_v24 }
 0x673   :  { %v890_v29 = vmul.f32 %v1024_v13, %v889_v26 }
 0x674   :  { %903 = vst.msk [vmem:[#allocation11] sm:$0xff] %vm135_vm0, %v901_v27 }
 0x675   :  { %v894_v28 = vsel %vm893_vm13, %v1024_v13, %v890_v29 }
 0x676   :  { %v896_v30 = vmul.f32 %v894_v28, %v862_v61 }
 0x678   :  { %v899_v20 = vmul.f32 %v897_v18, %v896_v30 }
 0x67a   :  { %v902_v31 = vadd.f32 %v900_v21, %v899_v20 }
 0x67c   :  { %904 = vst.msk [vmem:[#allocation11 + $0x8] sm:$0xff] %vm135_vm0, %v902_v31 }
 0x67d   :  { %917 = dma.vmem_to_hbm [thread:$0]  %s910_s14, 256, %s912_s16, [#allocation4], %s1178_s29, %s1178_s29, %s1179_s30  }
 0x67e   :  { %1175 = dma.done.wait [#allocation4], 256  }
 0x67f   :  { %1176 = vsyncadd [#allocation4], 4294967040 }
 0x680   :  { %922 = vsyncpa [#allocation3], 1 }
 0x681   :  { %923 = vsyncpa [#allocation6], 1 }
 0x682   :  { %924 = vsyncpa [#allocation9], 1 }
 0x683   :  { %925 = vsyncpa [#allocation4], 1 }

</bundles_post_ra>
